<compile_context>
chip_gen: v5e
topology: v5e:2x2
jax: 0.10.0
libtpu: 0.0.40
codegen_flags: <defaults>
</compile_context>

<pallas_src>
import functools
import math

import jax
import jax.numpy as jnp
from jax.experimental import pallas as pl
from jax.experimental.pallas import tpu as pltpu


def _attention_merge_kernel(*refs, has_mask):
    if has_mask:
        v_ref, m_ref, w_ref, b_ref, q_ref, o_ref = refs
    else:
        v_ref, w_ref, b_ref, q_ref, o_ref = refs
        m_ref = None

    TB, L, H = v_ref.shape

    v = v_ref[...]                                                  # (TB, L, H)

    # keys = tanh(values @ W^T + b): one (TB*L, H) @ (H, A) MXU matmul.
    keys = jnp.tanh(
        jnp.dot(v.reshape(TB * L, H), w_ref[...],
                preferred_element_type=jnp.float32)
        + b_ref[...]
    )                                                               # (TB*L, A)

    # logits = keys @ (query / scale): VPU multiply + lane reduction instead of
    # an N=1 MXU matmul (query is pre-scaled by 1/sqrt(A*var) in the wrapper).
    logits = jnp.sum(keys * q_ref[...], axis=-1, keepdims=True)     # (TB*L, 1)
    logits = logits.reshape(TB, L, 1)

    if has_mask:
        scores = logits * m_ref[...]                                # (TB, L, 1)
    else:
        # torch: logits * zeros_like(values) == 0 everywhere (logits finite).
        scores = jnp.zeros_like(logits)

    # softmax over the sequence axis (torch dim=1), on the width-1 column only.
    smax = jnp.max(scores, axis=1, keepdims=True)                   # (TB, 1, 1)
    e = jnp.exp(scores - smax)                                      # (TB, L, 1)
    denom = jnp.sum(e, axis=1, keepdims=True)                       # (TB, 1, 1)
    probs = e / denom                                               # (TB, L, 1)

    # TODO(synk): nn.Dropout on attention_probs is identity at inference; skipped.

    # context = sum_l(probs + values) = sum_l(probs) + sum_l(values)
    p_sum = jnp.sum(probs, axis=1, keepdims=True)                   # (TB, 1, 1)
    v_sum = jnp.sum(v, axis=1, keepdims=True)                       # (TB, 1, H)
    o_ref[...] = (p_sum + v_sum).astype(o_ref.dtype)                # (TB, 1, H)


def _pick_batch_tile(B, L, H, target_rows=256, vmem_budget_bytes=8 * 1024 * 1024):
    """Largest divisor of B whose double-buffered values block fits the budget,
    preferring the smallest one with TB*L >= target_rows (MXU / pipeline fill)."""
    block_bytes_per_batch = L * H * 4 * 2            # f32 values block, x2 buffers
    max_tb = max(1, vmem_budget_bytes // block_bytes_per_batch)
    best = 1
    for tb in range(1, B + 1):
        if B % tb == 0 and tb <= max_tb:
            best = tb
            if tb * L >= target_rows:
                break
    return best


def attention_merge(values, weight, bias, query, mask=None, *, batch_tile=None):
    """values: (B, L, H); weight: (A, H); bias: (A,); query: (A, 1); mask: (B, L) or None."""
    B, L, H = values.shape
    A = weight.shape[0]

    # scale = sqrt(A * var(query, unbiased=True)); fold 1/scale into the query
    # row so the kernel never divides (wrapper touches only the (A, 1) tensor).
    q_var = jnp.var(query, ddof=1)
    inv_scale = 1.0 / jnp.sqrt(A * q_var)
    q_row = (query.reshape(1, A) * inv_scale).astype(jnp.float32)
    b_row = bias.reshape(1, A).astype(jnp.float32)
    w_t = weight.T                                   # (H, A)

    if batch_tile is None:
        batch_tile = _pick_batch_tile(B, L, H)
    TB = batch_tile
    assert B % TB == 0, (B, TB)
    # TODO(synk): very long L would need an extra "arbitrary" L-tiling grid axis
    # with an online softmax; here the full (TB, L, H) block is VMEM-resident.

    in_specs = [pl.BlockSpec((TB, L, H), lambda b: (b, 0, 0))]       # values
    inputs = [values]
    if mask is not None:
        # torch: mask_term = (1 - mask.unsqueeze(-1).float()) * -1000.0 -> (B, L, 1)
        mask_term = (1.0 - mask[..., None].astype(jnp.float32)) * -1000.0
        in_specs.append(pl.BlockSpec((TB, L, 1), lambda b: (b, 0, 0)))
        inputs.append(mask_term)
    in_specs += [
        pl.BlockSpec((H, A), lambda b: (0, 0)),                      # W^T
        pl.BlockSpec((1, A), lambda b: (0, 0)),                      # bias row
        pl.BlockSpec((1, A), lambda b: (0, 0)),                      # scaled query row
    ]
    inputs += [w_t, b_row, q_row]

    out = pl.pallas_call(
        functools.partial(_attention_merge_kernel, has_mask=mask is not None),
        out_shape=jax.ShapeDtypeStruct((B, 1, H), values.dtype),
        grid=(B // TB,),
        in_specs=in_specs,
        out_specs=pl.BlockSpec((TB, 1, H), lambda b: (b, 0, 0)),
        compiler_params=pltpu.CompilerParams(
            dimension_semantics=("parallel",),
            vmem_limit_bytes=32 * 1024 * 1024,
        ),
    )(*inputs)

    return out[:, 0, :]                              # (B, H)


def _reference(values, weight, bias, query, mask=None):
    """Pure-JAX mirror of the PyTorch forward (for verification)."""
    if mask is None:
        m = jnp.zeros_like(values)
    else:
        m = (1.0 - mask[..., None].astype(jnp.float32)) * -1000.0
    keys = jnp.tanh(values @ weight.T + bias)
    q_var = jnp.var(query, ddof=1)
    probs = (keys @ query) / jnp.sqrt(weight.shape[0] * q_var)
    probs = jax.nn.softmax(probs * m, axis=1)
    return jnp.sum(probs + values, axis=1)


if __name__ == "__main__":
    # batch=8, seq_len=8, input_size(hidden)=32, attention_size=16
    B, L, H, A = 8, 8, 32, 16

    key = jax.random.PRNGKey(0)
    k_v, k_w, k_b, k_q, k_m = jax.random.split(key, 5)

    values = jax.random.normal(k_v, (B, L, H), dtype=jnp.float32)
    # hidden_layer: Linear(H -> A) => weight (A, H), bias (A,)
    # query_:       Parameter (A, 1), normal(0, 0.02)
    weight = jax.random.normal(k_w, (A, H), dtype=jnp.float32) * (1.0 / math.sqrt(H))
    bias = jax.random.normal(k_b, (A,), dtype=jnp.float32) * 0.01
    query = jax.random.normal(k_q, (A, 1), dtype=jnp.float32) * 0.02

    # 1) mask=None path (torch default): auto batch tile.
    out = attention_merge(values, weight, bias, query)
    out = jax.block_until_ready(out)
    expected = _reference(values, weight, bias, query)
    assert out.shape == (B, H), out.shape
    assert jnp.allclose(out, expected, atol=1e-5, rtol=1e-5), (
        float(jnp.max(jnp.abs(out - expected))))

    # 2) masked path with an explicit batch tile -> grid=(2,), parallel batch axis.
    mask = (jax.random.uniform(k_m, (B, L)) > 0.3).astype(jnp.int32)
    out_m = attention_merge(values, weight, bias, query, mask=mask, batch_tile=4)
    out_m = jax.block_until_ready(out_m)
    expected_m = _reference(values, weight, bias, query, mask=mask)
    assert out_m.shape == (B, H), out_m.shape
    assert jnp.allclose(out_m, expected_m, atol=1e-5, rtol=1e-5), (
        float(jnp.max(jnp.abs(out_m - expected_m))))

    print("KERNEL_OK")
</pallas_src>

<mosaic_0001>
module attributes {stable_mosaic.version = 11 : i64} {
  func.func @_attention_merge_kernel(%arg0: i32, %arg1: memref<8x8x32xf32, #tpu.memory_space<vmem>>, %arg2: memref<32x16xf32, #tpu.memory_space<vmem>>, %arg3: memref<1x16xf32, #tpu.memory_space<vmem>>, %arg4: memref<1x16xf32, #tpu.memory_space<vmem>>, %arg5: memref<8x1x32xf32, #tpu.memory_space<vmem>>) attributes {dimension_semantics = [#tpu.dimension_semantics<parallel>], iteration_bounds = array<i64: 1>, scalar_prefetch = 0 : i64, scratch_operands = 0 : i64, tpu.core_type = #tpu.core_type<tc>, window_params = [{transform_indices = @transform_0, window_bounds = array<i64: 8, 8, 32>}, {pipeline_mode = #tpu.pipeline_mode<synchronous>, transform_indices = @transform_1, window_bounds = array<i64: 32, 16>}, {pipeline_mode = #tpu.pipeline_mode<synchronous>, transform_indices = @transform_2, window_bounds = array<i64: 1, 16>}, {pipeline_mode = #tpu.pipeline_mode<synchronous>, transform_indices = @transform_3, window_bounds = array<i64: 1, 16>}, {transform_indices = @transform_4, window_bounds = array<i64: 8, 1, 32>}]} {
    %c0 = arith.constant 0 : index
    %c0_0 = arith.constant 0 : index
    %c0_1 = arith.constant 0 : index
    %0 = vector.load %arg1[%c0, %c0_0, %c0_1] : memref<8x8x32xf32, #tpu.memory_space<vmem>>, vector<8x8x32xf32>
    %cst = arith.constant 0.000000e+00 : f32
    %1 = vector.broadcast %cst : f32 to vector<8x8x1xf32>
    %cst_2 = arith.constant dense<0xFF800000> : vector<8x1xf32>
    %2 = vector.multi_reduction <maximumf>, %1, %cst_2 [1] : vector<8x8x1xf32> to vector<8x1xf32>
    %3 = vector.shape_cast %2 : vector<8x1xf32> to vector<8x1x1xf32>
    %4 = vector.broadcast %3 : vector<8x1x1xf32> to vector<8x8x1xf32>
    %5 = arith.subf %1, %4 : vector<8x8x1xf32>
    %6 = math.exp %5 : vector<8x8x1xf32>
    %cst_3 = arith.constant dense<0.000000e+00> : vector<8x1xf32>
    %7 = vector.multi_reduction <add>, %6, %cst_3 [1] : vector<8x8x1xf32> to vector<8x1xf32>
    %8 = vector.shape_cast %7 : vector<8x1xf32> to vector<8x1x1xf32>
    %9 = vector.broadcast %8 : vector<8x1x1xf32> to vector<8x8x1xf32>
    %10 = arith.divf %6, %9 : vector<8x8x1xf32>
    %cst_4 = arith.constant dense<0.000000e+00> : vector<8x1xf32>
    %11 = vector.multi_reduction <add>, %10, %cst_4 [1] : vector<8x8x1xf32> to vector<8x1xf32>
    %12 = vector.shape_cast %11 : vector<8x1xf32> to vector<8x1x1xf32>
    %cst_5 = arith.constant dense<0.000000e+00> : vector<8x32xf32>
    %13 = vector.multi_reduction <add>, %0, %cst_5 [1] : vector<8x8x32xf32> to vector<8x32xf32>
    %14 = vector.shape_cast %13 : vector<8x32xf32> to vector<8x1x32xf32>
    %15 = vector.broadcast %12 : vector<8x1x1xf32> to vector<8x1x32xf32>
    %16 = arith.addf %15, %14 : vector<8x1x32xf32>
    %c0_6 = arith.constant 0 : index
    %c0_7 = arith.constant 0 : index
    %c0_8 = arith.constant 0 : index
    %17 = vector.load %arg5[%c0_6, %c0_7, %c0_8] : memref<8x1x32xf32, #tpu.memory_space<vmem>>, vector<8x1x32xf32>
    tpu.vector_store %arg5[%c0_6, %c0_7, %c0_8], %16 {strides = array<i32>} : memref<8x1x32xf32, #tpu.memory_space<vmem>>, vector<8x1x32xf32>,
    return
  }
  func.func @transform_0(%arg0: i32) -> (i32, i32, i32) {
    %c0_i32 = arith.constant 0 : i32
    %c0_i32_0 = arith.constant 0 : i32
    %c0_i32_1 = arith.constant 0 : i32
    return %arg0, %c0_i32, %c0_i32_0 : i32, i32, i32
  }
  func.func @transform_1(%arg0: i32) -> (i32, i32) {
    %c0_i32 = arith.constant 0 : i32
    %c0_i32_0 = arith.constant 0 : i32
    %c0_i32_1 = arith.constant 0 : i32
    return %c0_i32, %c0_i32_0 : i32, i32
  }
  func.func @transform_2(%arg0: i32) -> (i32, i32) {
    %c0_i32 = arith.constant 0 : i32
    %c0_i32_0 = arith.constant 0 : i32
    %c0_i32_1 = arith.constant 0 : i32
    return %c0_i32, %c0_i32_0 : i32, i32
  }
  func.func @transform_3(%arg0: i32) -> (i32, i32) {
    %c0_i32 = arith.constant 0 : i32
    %c0_i32_0 = arith.constant 0 : i32
    %c0_i32_1 = arith.constant 0 : i32
    return %c0_i32, %c0_i32_0 : i32, i32
  }
  func.func @transform_4(%arg0: i32) -> (i32, i32, i32) {
    %c0_i32 = arith.constant 0 : i32
    %c0_i32_0 = arith.constant 0 : i32
    %c0_i32_1 = arith.constant 0 : i32
    return %arg0, %c0_i32, %c0_i32_0 : i32, i32, i32
  }
}

</mosaic_0001>

<bundles_post_ra>
// kernel: tpu_custom_call.1
= control target key start
LH: loop header
LB: loop body
LE: loop exit
PB: predicated region body
PF: predicated region fallthrough
CT: control target
= control target key end

     0   :  { %9 = vsyncpa [#allocation3], 0  ;;  %s265_s0 = inlined_call_operand.hbm [shape: f32[8,8,32], index: 0, kind: input, shape index: {}]   ;;  %s266_s1 = inlined_call_operand.vmem [shape: f32[32,16], index: 1, kind: input, shape index: {}]   ;;  %s267_s2 = inlined_call_operand.vmem [shape: f32[1,16], index: 2, kind: input, shape index: {}]   ;;  %s268_s3 = inlined_call_operand.vmem [shape: f32[1,16], index: 3, kind: input, shape index: {}]   ;;  %s269_s4 = inlined_call_operand.hbm [shape: f32[8,1,32], index: 4, kind: output, shape index: {}]  }
   0x1   :  { %10 = vsyncpa [#allocation4], 0  ;;  %s15_s17 = sshll.u32 %s265_s0, 4  ;;  %s210_s18 = smov [#allocation2]   ;;  %s16_s17 = int_to_ptr.hbm [resolvable:$true] %s15_s17 }
   0x2   :  { %s17_s19 = sshll.u32 %s210_s18, 4  ;;  %s211_s1 = smov 128   ;;  %s18_s19 = int_to_ptr.vmem [resolvable:$true] %s17_s19 }
   0x3   :  { %s212_s20 = smov 8  }
   0x4   :  { %23 = dma.hbm_to_vmem [thread:$0]  %s16_s17, 1024, %s18_s19, [#allocation3], %s211_s1, %s211_s1, %s212_s20  }
   0x5   :  { %206 = dma.done.wait [#allocation3], 1024  }
   0x6   :  { %207 = vsyncadd [#allocation3], 4294966272  ;;  %v213_v0 = vmov 8.0   ;;  %vm56_vm0 = vcmask 261120   ;;  %v34_v2 = vld [vmem:[#allocation2] sm:$0xff]  ;;  %v35_v3 = vld [vmem:[#allocation2 + $0x8] sm:$0xff] }
   0x7   :  { %156 = vrcp.f32 %v213_v0  ;;  %v36_v4 = vld [vmem:[#allocation2 + $0x10] sm:$0xff]  ;;  %v57_v6 = vsel %vm56_vm0, %v34_v2, 0.0  ;;  %v64_v7 = vsel %vm56_vm0, %v35_v3, 0.0  ;;  %v37_v8 = vld [vmem:[#allocation2 + $0x18] sm:$0xff]  ;;  %v38_v9 = vld [vmem:[#allocation2 + $0x20] sm:$0xff]  ;;  %vm121_vm2 = vcmask 253952  }
   0x8   :  { %v39_v10 = vld [vmem:[#allocation2 + $0x28] sm:$0xff]  ;;  %v58_v11 = vrot.slane %v57_v6, 4  ;;  %v65_v12 = vrot.slane %v64_v7, 4  ;;  %v71_v13 = vsel %vm56_vm0, %v36_v4, 0.0  ;;  %v78_v14 = vsel %vm56_vm0, %v37_v8, 0.0  ;;  %v40_v19 = vld [vmem:[#allocation2 + $0x30] sm:$0xff] }
   0x9   :  { %v72_v16 = vrot.slane %v71_v13, 4  ;;  %v79_v17 = vrot.slane %v78_v14, 4  ;;  %v85_v18 = vsel %vm56_vm0, %v38_v9, 0.0  ;;  %v92_v23 = vsel %vm56_vm0, %v39_v10, 0.0  ;;  %v41_v46 = vld [vmem:[#allocation2 + $0x38] sm:$0xff]  ;;  %s214_s0 = smov [#allocation5]  }
   0xa   :  { %v59_v20 = vadd.f32 %v58_v11, %v57_v6  ;;  %v66_v21 = vadd.f32 %v65_v12, %v64_v7  ;;  %v86_v22 = vrot.slane %v85_v18, 4  ;;  %v93_v27 = vrot.slane %v92_v23, 4  ;;  %s134_s2 = sshll.u32 %s214_s0, 4  ;;  %s136_s22 = sshll.u32 %s269_s4, 4  ;;  %s135_s2 = int_to_ptr.vmem [resolvable:$true] %s134_s2  ;;  %s137_s22 = int_to_ptr.hbm [resolvable:$true] %s136_s22 }
   0xb   :  { %v73_v25 = vadd.f32 %v72_v16, %v71_v13  ;;  %v80_v26 = vadd.f32 %v79_v17, %v78_v14  ;;  %v99_v31 = vsel %vm56_vm0, %v40_v19, 0.0  ;;  %v106_v55 = vsel %vm56_vm0, %v41_v46, 0.0  ;;  %s215_s23 = smov 16   ;;  %s216_s24 = smov 1  }
   0xc   :  { %v60_v28 = vrot.slane %v59_v20, 2  ;;  %v67_v29 = vrot.slane %v66_v21, 2  ;;  %v87_v30 = vadd.f32 %v86_v22, %v85_v18  ;;  %v94_v35 = vadd.f32 %v93_v27, %v92_v23 }
   0xd   :  { %v157_v1 = vpop.eup %156  ;;  %v74_v33 = vrot.slane %v73_v25, 2  ;;  %v81_v34 = vrot.slane %v80_v26, 2  ;;  %v100_v37 = vrot.slane %v99_v31, 4  ;;  %v107_v58 = vrot.slane %v106_v55, 4 }
   0xe   :  { %v43_v5 = vmul.f32 8.0, %v157_v1  ;;  %vm47_vm1 = vweird.f32 %v157_v1  ;;  %v88_v36 = vrot.slane %v87_v30, 2  ;;  %v61_v39 = vadd.f32 %v60_v28, %v59_v20 }
   0xf   :  { %v95_v40 = vrot.slane %v94_v35, 2  ;;  %v68_v42 = vadd.f32 %v67_v29, %v66_v21  ;;  %v75_v43 = vadd.f32 %v74_v33, %v73_v25  ;;  %v82_v44 = vadd.f32 %v81_v34, %v80_v26 }
  0x10   :  { %v44_v15 = vsub.f32 1.0, %v43_v5  ;;  %v101_v45 = vadd.f32 %v100_v37, %v99_v31  ;;  %v89_v48 = vadd.f32 %v88_v36, %v87_v30  ;;  %v62_v49 = vrot.slane %v61_v39, 1 }
  0x11   :  { %v96_v50 = vadd.f32 %v95_v40, %v94_v35  ;;  %v69_v53 = vrot.slane %v68_v42, 1  ;;  %v76_v54 = vrot.slane %v75_v43, 1  ;;  %v83_v56 = vrot.slane %v82_v44, 1 }
  0x12   :  { %v45_v24 = vmul.f32 %v157_v1, %v44_v15  ;;  %v102_v51 = vrot.slane %v101_v45, 2  ;;  %v90_v60 = vrot.slane %v89_v48, 1  ;;  %v63_v61 = vadd.f32 %v62_v49, %v61_v39 }
  0x13   :  { %v97_v62 = vrot.slane %v96_v50, 1  ;;  %v108_v63 = vadd.f32 %v107_v58, %v106_v55  ;;  %v77_v2 = vadd.f32 %v76_v54, %v75_v43  ;;  %v84_v4 = vadd.f32 %v83_v56, %v82_v44 }
  0x14   :  { %v46_v32 = vadd.f32 %v157_v1, %v45_v24  ;;  %v103_v57 = vadd.f32 %v102_v51, %v101_v45  ;;  %v91_v7 = vadd.f32 %v90_v60, %v89_v48 }
  0x15   :  { %v109_v5 = vrot.slane %v108_v63, 2  ;;  %v98_v8 = vadd.f32 %v97_v62, %v96_v50 }
  0x16   :  { %v48_v38 = vsel %vm47_vm1, %v157_v1, %v46_v32  ;;  %v70_v1 = vadd.f32 %v69_v53, %v68_v42  ;;  %v104_v3 = vrot.slane %v103_v57, 1 }
  0x17   :  { %v50_v41 = vrot.slane %v48_v38, 4  ;;  %v110_v9 = vadd.f32 %v109_v5, %v108_v63 }
  0x18   :  { %v105_v13 = vadd.f32 %v104_v3, %v103_v57 }
  0x19   :  { %v51_v47 = vadd.f32 %v50_v41, %v48_v38  ;;  %v111_v15 = vrot.slane %v110_v9, 1 }
  0x1b   :  { %v52_v52 = vrot.slane %v51_v47, 2  ;;  %v112_v18 = vadd.f32 %v111_v15, %v110_v9 }
  0x1d   :  { %v53_v59 = vadd.f32 %v52_v52, %v51_v47 }
  0x1f   :  { %v54_v0 = vrot.slane %v53_v59, 1 }
  0x21   :  { %v55_v6 = vadd.f32 %v54_v0, %v53_v59 }
  0x23   :  { %v113_v10 = vadd.f32 %v63_v61, %v55_v6  ;;  %v114_v11 = vadd.f32 %v70_v1, %v55_v6  ;;  %v115_v12 = vadd.f32 %v77_v2, %v55_v6  ;;  %v116_v14 = vadd.f32 %v84_v4, %v55_v6 }
  0x24   :  { %v117_v16 = vadd.f32 %v91_v7, %v55_v6  ;;  %v118_v17 = vadd.f32 %v98_v8, %v55_v6  ;;  %v119_v19 = vadd.f32 %v105_v13, %v55_v6  ;;  %v120_v20 = vadd.f32 %v112_v18, %v55_v6 }
  0x25   :  { %122 = vst.msk [vmem:[#allocation5] sm:$0x1] %vm121_vm2, %v113_v10 }
  0x26   :  { %123 = vst.msk [vmem:[#allocation5 + $0x1] sm:$0x1] %vm121_vm2, %v114_v11 }
  0x27   :  { %124 = vst.msk [vmem:[#allocation5 + $0x2] sm:$0x1] %vm121_vm2, %v115_v12 }
  0x28   :  { %125 = vst.msk [vmem:[#allocation5 + $0x3] sm:$0x1] %vm121_vm2, %v116_v14 }
  0x29   :  { %126 = vst.msk [vmem:[#allocation5 + $0x4] sm:$0x1] %vm121_vm2, %v117_v16 }
  0x2a   :  { %127 = vst.msk [vmem:[#allocation5 + $0x5] sm:$0x1] %vm121_vm2, %v118_v17 }
  0x2b   :  { %128 = vst.msk [vmem:[#allocation5 + $0x6] sm:$0x1] %vm121_vm2, %v119_v19 }
  0x2c   :  { %129 = vst.msk [vmem:[#allocation5 + $0x7] sm:$0x1] %vm121_vm2, %v120_v20 }
  0x2d   :  { %142 = dma.vmem_to_hbm [thread:$0]  %s135_s2, 128, %s137_s22, [#allocation4], %s215_s23, %s215_s23, %s216_s24  }
  0x2e   :  { %208 = dma.done.wait [#allocation4], 128  }
  0x2f   :  { %209 = vsyncadd [#allocation4], 4294967168 }
  0x30   :  { %147 = vsyncpa [#allocation3], 1 }
  0x31   :  { %148 = vsyncpa [#allocation4], 1 }

</bundles_post_ra>
